<compile_context>
chip_gen: v5e
topology: v5e:2x2
jax: 0.10.0
libtpu: 0.0.40
codegen_flags: <defaults>
</compile_context>

<pallas_src>
import functools
import jax
import jax.numpy as jnp
from jax import lax
from jax.experimental import pallas as pl
from jax.experimental.pallas import tpu as pltpu

# ------------------------- synthetic, small sizes -------------------------
N_NODES   = 32   # total nodes in graph (len(list_action_space))
N_FEAT    = 16   # node_features.shape[1]
EMBED     = 32   # embed_dim
HIDDEN    = 32   # mlp_hidden
N_CLASSES = 4    # node_labels.max() + 1
N_INJECT  = 4    # n_injected
N_ACTIONS = 8    # candidate actions per state
BATCH     = 4    # states per call (realistic RL rollouts: 64-128)
MAX_LV    = 1    # rounds of message passing
OUT_LANES = 128  # lane-dense output width

assert EMBED == HIDDEN, "param-slab packing below assumes EMBED == HIDDEN"

# ----------------------- parameter slab layout -----------------------------
def _ceil8(n):
    return ((n + 7) // 8) * 8

_PARAM_ROWS = (
    ("xfeat", N_NODES),                # (N, F)   node features (call-invariant)
    ("w_n2l", N_FEAT),                 # (F, E)
    ("b_n2l", 1),                      # (1, E)
    ("wc", EMBED),                     # (E, E)   conv_params weight (x @ Wc)
    ("bc", 1),                         # (1, E)
    ("we1", N_CLASSES * N_INJECT),     # (C*I, H) label_encoder_1
    ("be1", 1),                        # (1, H)
    ("we2", HIDDEN),                   # (H, E)   label_encoder_2
    ("be2", 1),                        # (1, E)
    ("w1ab", 2 * EMBED),               # (2E, H)  linear_1 rows for [graph|label]
    ("w1c", EMBED),                    # (E, H)   linear_1 rows for action
    ("b1", 1),                         # (1, H)
    ("wout_t", 1),                     # (1, H)   linear_out weight, transposed
    ("bout", 1),                       # (1, 1)   linear_out bias (lane 0)
)
_OFF = {}
_row = 0
for _name, _rows in _PARAM_ROWS:
    _OFF[_name] = _row
    _row += _ceil8(_rows)              # keep every block sublane(8)-aligned
SLAB_ROWS = _row                       # 280
SLAB_COLS = EMBED                      # 32
# TODO(synk): a 128-lane-dense slab repack (4 param blocks per lane group)
# would shrink the slab DMA ~4x; skipped to keep all param reads lane-offset-0.


# ------------------------------- kernel -----------------------------------
def _make_qnet_kernel(actions_from_node_embed: bool, max_lv: int):
    """actions_from_node_embed == (time_t != 2) in the PyTorch module."""

    def kernel(p_ref, adj_ref, lab_ref, act_ref, out_ref):
        f32 = jnp.float32
        B, N, _ = adj_ref.shape
        A = act_ref.shape[1]
        E, H, C, I = EMBED, HIDDEN, N_CLASSES, N_INJECT

        def par(name, rows):
            return p_ref[pl.ds(_OFF[name], rows), :]

        # ---- feature projection (node_features packed in slab, done once) ----
        x = par("xfeat", N_NODES)[:, :N_FEAT]                              # (N, F)
        im = (jnp.dot(x, par("w_n2l", N_FEAT), preferred_element_type=f32)
              + par("b_n2l", 1))                                           # (N, E)
        ne0 = jnp.maximum(im, 0.0)
        im_b = im[None, :, :]                          # hoisted broadcast (1, N, E)

        # ---- message passing, all B states in one shot ----
        adj3 = adj_ref[...]                                                # (B, N, N)
        wc = par("wc", E)
        bc = par("bc", 1)
        # TODO(synk): for large graphs cast adj / ne to bf16 for the MXU inputs
        # (keep f32 accumulation); negligible at N=32 and avoided for v5e VPU.

        pool = jnp.einsum("bnm,me->bne", adj3, ne0,
                          preferred_element_type=f32)                      # (B, N, E)
        lin = jnp.einsum("bne,ef->bnf", pool, wc,
                         preferred_element_type=f32) + bc                  # (B, N, E)
        ne = jnp.maximum(lin + im_b, 0.0)                                  # (B, N, E)
        for _ in range(max_lv - 1):                                        # extra rounds
            pool = jnp.einsum("bnm,bme->bne", adj3, ne,
                              preferred_element_type=f32)
            lin = jnp.einsum("bne,ef->bnf", pool, wc,
                             preferred_element_type=f32) + bc
            ne = jnp.maximum(lin + im_b, 0.0)

        graph_embed = jnp.mean(ne, axis=1)                                 # (B, E)

        # ---- label embedding: one-hot built in-kernel from int32 labels ----
        lab = lab_ref[...]                                                 # (B, I) int32
        cls_iota = lax.broadcasted_iota(jnp.int32, (B, C), 1)
        oh = jnp.concatenate(
            [(cls_iota == lab[:, i:i + 1]).astype(f32) for i in range(I)],
            axis=1)                                                        # (B, C*I)
        h1 = jnp.maximum(jnp.dot(oh, par("we1", C * I),
                                 preferred_element_type=f32)
                         + par("be1", 1), 0.0)                             # (B, H)
        label_embed = jnp.maximum(jnp.dot(h1, par("we2", H),
                                          preferred_element_type=f32)
                                  + par("be2", 1), 0.0)                    # (B, E)

        # ---- shared part of the Q head: cat(graph, label) @ W1[ab] + b1 ----
        gl = jnp.concatenate([graph_embed, label_embed], axis=-1)          # (B, 2E)
        base = (jnp.dot(gl, par("w1ab", 2 * E), preferred_element_type=f32)
                + par("b1", 1))                                            # (B, H)

        # ---- per-action scores ----
        # The action gather commutes with the (per-row) Q head, so evaluate
        # wout . relu(row @ W1c + base) for every candidate source row, then
        # gather the A scalars per state with an iota==index mask + sublane max.
        acts = act_ref[...]                                                # (B, A) int32
        wout_row = par("wout_t", 1)                                        # (1, H)
        if actions_from_node_embed:
            src_all = jnp.einsum("bne,eh->bnh", ne, par("w1c", E),
                                 preferred_element_type=f32)               # (B, N, H)
            K = N
        else:
            w1c = par("w1c", E)                                            # (E, H)
            K = E                                   # one-hot(C) zero-padded to E

        k_iota = lax.broadcasted_iota(jnp.int32, (K, A), 0)
        raw_rows = []
        # Static unroll over the (small) batch; for large B move this to a
        # "parallel" batch-chunk grid axis instead (v7x: 2 TensorCores).
        for b in range(B):
            src = src_all[b] if actions_from_node_embed else w1c           # (K, H)
            h_b = jnp.maximum(src + base[b:b + 1, :], 0.0)                 # (K, H)
            col_b = jnp.sum(h_b * wout_row, axis=-1, keepdims=True)        # (K, 1)
            sel_b = (k_iota == acts[b:b + 1, :])                           # (K, A)
            raw_rows.append(jnp.max(jnp.where(sel_b, col_b, -jnp.inf),
                                    axis=0, keepdims=True))                # (1, A)
        raw = jnp.concatenate(raw_rows, axis=0)                            # (B, A)

        # ---- max / first-argmax + greedy action, all in-kernel ----
        ids = lax.broadcasted_iota(jnp.int32, (B, A), 1)
        q_max = jnp.max(raw, axis=-1, keepdims=True)                       # (B, 1)
        idx = jnp.min(jnp.where(raw == q_max, ids, A), axis=-1,
                      keepdims=True)                                       # (B, 1)
        idx = jnp.minimum(idx, A - 1)                                      # NaN guard
        greedy = jnp.sum(jnp.where(ids == idx, acts, 0), axis=-1,
                         keepdims=True)                                    # (B, 1) int32

        # linear_out bias shifts every score equally -> add after the max
        q_final = q_max + par("bout", 1)[:, :1]                            # (B, 1)

        # ---- single lane-dense output: lane0 = Q, lane1 = greedy action ----
        lane = lax.broadcasted_iota(jnp.int32, (B, OUT_LANES), 1)
        out_ref[...] = jnp.where(lane == 0, q_final,
                                 jnp.where(lane == 1, greedy.astype(f32), 0.0))

    return kernel


# ------------------------------- wrapper -----------------------------------
@functools.partial(jax.jit, static_argnums=(0,))
def qnet_forward(time_t, param_slab, adj_batch, labels_batch, actions_batch):
    B = adj_batch.shape[0]
    kernel = _make_qnet_kernel(time_t != 2, MAX_LV)
    vmem = lambda: pl.BlockSpec(memory_space=pltpu.MemorySpace.VMEM)

    out = pl.pallas_call(
        kernel,
        out_shape=jax.ShapeDtypeStruct((B, OUT_LANES), jnp.float32),
        in_specs=[vmem(), vmem(), vmem(), vmem()],
        out_specs=vmem(),
        compiler_params=pltpu.CompilerParams(vmem_limit_bytes=32 * 1024 * 1024),
    )(param_slab, adj_batch,
      labels_batch.astype(jnp.int32), actions_batch.astype(jnp.int32))

    preds = out[:, 0]                                  # preds[i] = raw_pred.max()
    greedy_actions = out[:, 1].astype(jnp.int32)       # actions[i][argmax]
    return greedy_actions, preds


# --------------------------- parameter init --------------------------------
def _glorot(key, shape):
    if len(shape) == 2:
        fan_in, fan_out = shape
    else:
        n = 1
        for s in shape:
            n *= s
        fan_in = fan_out = n
    limit = (6.0 / (fan_in + fan_out)) ** 0.5
    return jax.random.uniform(key, shape, jnp.float32, -limit, limit)


def init_params(key):
    ks = jax.random.split(key, 8)
    w_n2l = _glorot(ks[0], (N_FEAT, EMBED))                     # Parameter (F, E)
    # bias_n2l is a 1-D Parameter -> glorot "else" branch (fan_in = fan_out = E)
    lim = (6.0 / (2 * EMBED)) ** 0.5
    b_n2l = jax.random.uniform(ks[1], (1, EMBED), jnp.float32, -lim, lim)
    wc = _glorot(ks[2], (EMBED, EMBED))                         # conv_params weight
    bc = jnp.zeros((1, EMBED), jnp.float32)
    we1 = _glorot(ks[3], (N_CLASSES * N_INJECT, HIDDEN))        # label_encoder_1
    be1 = jnp.zeros((1, HIDDEN), jnp.float32)                   # TODO(synk): PyTorch leaves
    we2 = _glorot(ks[4], (HIDDEN, EMBED))                       # label_encoder_* at default
    be2 = jnp.zeros((1, EMBED), jnp.float32)                    # kaiming init (post weights_init)
    w1 = _glorot(ks[5], (3 * EMBED, HIDDEN))                    # linear_1 (3E -> H)
    b1 = jnp.zeros((1, HIDDEN), jnp.float32)
    wout = _glorot(ks[6], (HIDDEN, 1))                          # linear_out (H -> 1)
    bout = jnp.zeros((1, 1), jnp.float32)
    return (w_n2l, b_n2l, wc, bc, we1, be1, we2, be2, w1, b1, wout, bout)


def pack_params(params, node_features):
    """Pack node_features + all weights into one sublane-aligned (280, 32) slab."""
    (w_n2l, b_n2l, wc, bc, we1, be1, we2, be2, w1, b1, wout, bout) = params
    entries = {
        "xfeat": node_features,              # (N, F), zero-padded to 32 lanes
        "w_n2l": w_n2l,
        "b_n2l": b_n2l.reshape(1, EMBED),
        "wc": wc,
        "bc": bc.reshape(1, EMBED),
        "we1": we1,
        "be1": be1.reshape(1, HIDDEN),
        "we2": we2,
        "be2": be2.reshape(1, EMBED),
        "w1ab": w1[: 2 * EMBED],
        "w1c": w1[2 * EMBED:],
        "b1": b1.reshape(1, HIDDEN),
        "wout_t": wout.reshape(1, HIDDEN),   # (H,1) column -> (1,H) row
        "bout": bout.reshape(1, 1),
    }
    slab = jnp.zeros((SLAB_ROWS, SLAB_COLS), jnp.float32)
    for name, arr in entries.items():
        off = _OFF[name]
        slab = slab.at[off:off + arr.shape[0], :arr.shape[1]].set(
            arr.astype(jnp.float32))
    return slab


# --------------------------------- demo ------------------------------------
if __name__ == "__main__":
    key = jax.random.PRNGKey(0)
    k_feat, k_adj, k_lab, k_act, k_act2, k_par = jax.random.split(key, 6)

    node_features = jax.random.normal(k_feat, (N_NODES, N_FEAT), jnp.float32)

    # random symmetric adjacency per state; row-normalize (A + I)
    # TODO(synk): GraphNormTool.norm_extra exact normalization not reproduced here.
    raw = (jax.random.uniform(k_adj, (BATCH, N_NODES, N_NODES)) < 0.2).astype(jnp.float32)
    adj = jnp.clip(raw + jnp.transpose(raw, (0, 2, 1)), 0.0, 1.0) + jnp.eye(N_NODES)[None]
    adj = adj / jnp.sum(adj, axis=-1, keepdims=True)

    labels = jax.random.randint(k_lab, (BATCH, N_INJECT), 0, N_CLASSES, dtype=jnp.int32)
    actions = jax.random.randint(k_act, (BATCH, N_ACTIONS), 0, N_NODES, dtype=jnp.int32)
    actions_lbl = jax.random.randint(k_act2, (BATCH, N_ACTIONS), 0, N_CLASSES,
                                     dtype=jnp.int32)

    params = init_params(k_par)
    slab = pack_params(params, node_features)   # packed once, reused across calls

    # time_t != 2: actions index graph nodes (gather from node embeddings)
    ga0, p0 = qnet_forward(0, slab, adj, labels, actions)
    # time_t == 2: actions are label ids (one-hot padded to embed_dim)
    ga2, p2 = qnet_forward(2, slab, adj, labels, actions_lbl)

    jax.block_until_ready((ga0, p0, ga2, p2))
    assert p0.shape == (BATCH,) and ga0.shape == (BATCH,)
    assert p2.shape == (BATCH,) and ga2.shape == (BATCH,)
    print("KERNEL_OK")
</pallas_src>

<mosaic_0001>
module attributes {stable_mosaic.version = 11 : i64} {
  func.func @kernel(%arg0: memref<280x32xf32, #tpu.memory_space<vmem>>, %arg1: memref<4x32x32xf32, #tpu.memory_space<vmem>>, %arg2: memref<4x4xi32, #tpu.memory_space<vmem>>, %arg3: memref<4x8xi32, #tpu.memory_space<vmem>>, %arg4: memref<4x128xf32, #tpu.memory_space<vmem>>) attributes {dimension_semantics = [], scalar_prefetch = 0 : i64, scratch_operands = 0 : i64, tpu.core_type = #tpu.core_type<tc>} {
    %c0 = arith.constant 0 : index
    %c0_0 = arith.constant 0 : index
    %0 = vector.load %arg0[%c0, %c0_0] : memref<280x32xf32, #tpu.memory_space<vmem>>, vector<32x32xf32>
    %1 = vector.extract_strided_slice %0 {offsets = [0, 0], sizes = [32, 16], strides = [1, 1]} : vector<32x32xf32> to vector<32x16xf32>
    %c32 = arith.constant 32 : index
    %c0_1 = arith.constant 0 : index
    %2 = vector.load %arg0[%c32, %c0_1] : memref<280x32xf32, #tpu.memory_space<vmem>>, vector<16x32xf32>
    %cst = arith.constant dense<0.000000e+00> : vector<32x32xf32>
    %3 = tpu.matmul %1, %2, %cst {dimension_numbers = #tpu.dot_dimension_numbers<[1], [0], [0], [1], [0, 0, 1, 1], [], []>} : vector<32x16xf32>, vector<16x32xf32>, vector<32x32xf32> -> vector<32x32xf32>
    %c48 = arith.constant 48 : index
    %c0_2 = arith.constant 0 : index
    %4 = vector.load %arg0[%c48, %c0_2] : memref<280x32xf32, #tpu.memory_space<vmem>>, vector<1x32xf32>
    %5 = vector.broadcast %4 : vector<1x32xf32> to vector<32x32xf32>
    %6 = arith.addf %3, %5 : vector<32x32xf32>
    %cst_3 = arith.constant 0.000000e+00 : f32
    %7 = vector.broadcast %cst_3 : f32 to vector<32x32xf32>
    %8 = arith.maximumf %6, %7 : vector<32x32xf32>
    %9 = vector.shape_cast %6 : vector<32x32xf32> to vector<1x32x32xf32>
    %c0_4 = arith.constant 0 : index
    %c0_5 = arith.constant 0 : index
    %c0_6 = arith.constant 0 : index
    %10 = vector.load %arg1[%c0_4, %c0_5, %c0_6] : memref<4x32x32xf32, #tpu.memory_space<vmem>>, vector<4x32x32xf32>
    %c56 = arith.constant 56 : index
    %c0_7 = arith.constant 0 : index
    %11 = vector.load %arg0[%c56, %c0_7] : memref<280x32xf32, #tpu.memory_space<vmem>>, vector<32x32xf32>
    %c88 = arith.constant 88 : index
    %c0_8 = arith.constant 0 : index
    %12 = vector.load %arg0[%c88, %c0_8] : memref<280x32xf32, #tpu.memory_space<vmem>>, vector<1x32xf32>
    "tpu.trace_start"() <{level = 10 : i32, message = "bnm,me->bne"}> : () -> ()
    %cst_9 = arith.constant dense<0.000000e+00> : vector<4x32x32xf32>
    %13 = tpu.matmul %10, %8, %cst_9 {dimension_numbers = #tpu.dot_dimension_numbers<[2], [0], [0, 1], [1], [0, 0, 0, 1, 1, 1], [], []>} : vector<4x32x32xf32>, vector<32x32xf32>, vector<4x32x32xf32> -> vector<4x32x32xf32>
    "tpu.trace_stop"() : () -> ()
    "tpu.trace_start"() <{level = 10 : i32, message = "bne,ef->bnf"}> : () -> ()
    %cst_10 = arith.constant dense<0.000000e+00> : vector<4x32x32xf32>
    %14 = tpu.matmul %13, %11, %cst_10 {dimension_numbers = #tpu.dot_dimension_numbers<[2], [0], [0, 1], [1], [0, 0, 0, 1, 1, 1], [], []>} : vector<4x32x32xf32>, vector<32x32xf32>, vector<4x32x32xf32> -> vector<4x32x32xf32>
    "tpu.trace_stop"() : () -> ()
    %15 = vector.shape_cast %12 : vector<1x32xf32> to vector<1x1x32xf32>
    %16 = vector.broadcast %15 : vector<1x1x32xf32> to vector<4x32x32xf32>
    %17 = arith.addf %14, %16 : vector<4x32x32xf32>
    %18 = vector.broadcast %9 : vector<1x32x32xf32> to vector<4x32x32xf32>
    %19 = arith.addf %17, %18 : vector<4x32x32xf32>
    %cst_11 = arith.constant 0.000000e+00 : f32
    %20 = vector.broadcast %cst_11 : f32 to vector<4x32x32xf32>
    %21 = arith.maximumf %19, %20 : vector<4x32x32xf32>
    %cst_12 = arith.constant dense<0.000000e+00> : vector<4x32xf32>
    %22 = vector.multi_reduction <add>, %21, %cst_12 [1] : vector<4x32x32xf32> to vector<4x32xf32>
    %cst_13 = arith.constant 3.200000e+01 : f32
    %23 = vector.broadcast %cst_13 : f32 to vector<4x32xf32>
    %24 = arith.divf %22, %23 : vector<4x32xf32>
    %c0_14 = arith.constant 0 : index
    %c0_15 = arith.constant 0 : index
    %25 = vector.load %arg2[%c0_14, %c0_15] : memref<4x4xi32, #tpu.memory_space<vmem>>, vector<4x4xi32>
    %26 = tpu.iota {dimensions = array<i32: 1>} : vector<4x4xi32>
    %27 = vector.extract_strided_slice %25 {offsets = [0, 0], sizes = [4, 1], strides = [1, 1]} : vector<4x4xi32> to vector<4x1xi32>
    %28 = vector.broadcast %27 : vector<4x1xi32> to vector<4x4xi32>
    %29 = arith.cmpi eq, %26, %28 : vector<4x4xi32>
    %30 = arith.extui %29 : vector<4x4xi1> to vector<4x4xi32>
    %31 = arith.sitofp %30 : vector<4x4xi32> to vector<4x4xf32>
    %32 = vector.extract_strided_slice %25 {offsets = [0, 1], sizes = [4, 1], strides = [1, 1]} : vector<4x4xi32> to vector<4x1xi32>
    %33 = vector.broadcast %32 : vector<4x1xi32> to vector<4x4xi32>
    %34 = arith.cmpi eq, %26, %33 : vector<4x4xi32>
    %35 = arith.extui %34 : vector<4x4xi1> to vector<4x4xi32>
    %36 = arith.sitofp %35 : vector<4x4xi32> to vector<4x4xf32>
    %37 = vector.extract_strided_slice %25 {offsets = [0, 2], sizes = [4, 1], strides = [1, 1]} : vector<4x4xi32> to vector<4x1xi32>
    %38 = vector.broadcast %37 : vector<4x1xi32> to vector<4x4xi32>
    %39 = arith.cmpi eq, %26, %38 : vector<4x4xi32>
    %40 = arith.extui %39 : vector<4x4xi1> to vector<4x4xi32>
    %41 = arith.sitofp %40 : vector<4x4xi32> to vector<4x4xf32>
    %42 = vector.extract_strided_slice %25 {offsets = [0, 3], sizes = [4, 1], strides = [1, 1]} : vector<4x4xi32> to vector<4x1xi32>
    %43 = vector.broadcast %42 : vector<4x1xi32> to vector<4x4xi32>
    %44 = arith.cmpi eq, %26, %43 : vector<4x4xi32>
    %45 = arith.extui %44 : vector<4x4xi1> to vector<4x4xi32>
    %46 = arith.sitofp %45 : vector<4x4xi32> to vector<4x4xf32>
    %47 = tpu.concatenate %31, %36, %41, %46 in 1 : vector<4x4xf32>, vector<4x4xf32>, vector<4x4xf32>, vector<4x4xf32> -> vector<4x16xf32>
    %c96 = arith.constant 96 : index
    %c0_16 = arith.constant 0 : index
    %48 = vector.load %arg0[%c96, %c0_16] : memref<280x32xf32, #tpu.memory_space<vmem>>, vector<16x32xf32>
    %cst_17 = arith.constant dense<0.000000e+00> : vector<4x32xf32>
    %49 = tpu.matmul %47, %48, %cst_17 {dimension_numbers = #tpu.dot_dimension_numbers<[1], [0], [0], [1], [0, 0, 1, 1], [], []>} : vector<4x16xf32>, vector<16x32xf32>, vector<4x32xf32> -> vector<4x32xf32>
    %c112 = arith.constant 112 : index
    %c0_18 = arith.constant 0 : index
    %50 = vector.load %arg0[%c112, %c0_18] : memref<280x32xf32, #tpu.memory_space<vmem>>, vector<1x32xf32>
    %51 = vector.broadcast %50 : vector<1x32xf32> to vector<4x32xf32>
    %52 = arith.addf %49, %51 : vector<4x32xf32>
    %cst_19 = arith.constant 0.000000e+00 : f32
    %53 = vector.broadcast %cst_19 : f32 to vector<4x32xf32>
    %54 = arith.maximumf %52, %53 : vector<4x32xf32>
    %c120 = arith.constant 120 : index
    %c0_20 = arith.constant 0 : index
    %55 = vector.load %arg0[%c120, %c0_20] : memref<280x32xf32, #tpu.memory_space<vmem>>, vector<32x32xf32>
    %cst_21 = arith.constant dense<0.000000e+00> : vector<4x32xf32>
    %56 = tpu.matmul %54, %55, %cst_21 {dimension_numbers = #tpu.dot_dimension_numbers<[1], [0], [0], [1], [0, 0, 1, 1], [], []>} : vector<4x32xf32>, vector<32x32xf32>, vector<4x32xf32> -> vector<4x32xf32>
    %c152 = arith.constant 152 : index
    %c0_22 = arith.constant 0 : index
    %57 = vector.load %arg0[%c152, %c0_22] : memref<280x32xf32, #tpu.memory_space<vmem>>, vector<1x32xf32>
    %58 = vector.broadcast %57 : vector<1x32xf32> to vector<4x32xf32>
    %59 = arith.addf %56, %58 : vector<4x32xf32>
    %cst_23 = arith.constant 0.000000e+00 : f32
    %60 = vector.broadcast %cst_23 : f32 to vector<4x32xf32>
    %61 = arith.maximumf %59, %60 : vector<4x32xf32>
    %62 = tpu.concatenate %24, %61 in 1 : vector<4x32xf32>, vector<4x32xf32> -> vector<4x64xf32>
    %c160 = arith.constant 160 : index
    %c0_24 = arith.constant 0 : index
    %63 = vector.load %arg0[%c160, %c0_24] : memref<280x32xf32, #tpu.memory_space<vmem>>, vector<64x32xf32>
    %cst_25 = arith.constant dense<0.000000e+00> : vector<4x32xf32>
    %64 = tpu.matmul %62, %63, %cst_25 {dimension_numbers = #tpu.dot_dimension_numbers<[1], [0], [0], [1], [0, 0, 1, 1], [], []>} : vector<4x64xf32>, vector<64x32xf32>, vector<4x32xf32> -> vector<4x32xf32>
    %c256 = arith.constant 256 : index
    %c0_26 = arith.constant 0 : index
    %65 = vector.load %arg0[%c256, %c0_26] : memref<280x32xf32, #tpu.memory_space<vmem>>, vector<1x32xf32>
    %66 = vector.broadcast %65 : vector<1x32xf32> to vector<4x32xf32>
    %67 = arith.addf %64, %66 : vector<4x32xf32>
    %c0_27 = arith.constant 0 : index
    %c0_28 = arith.constant 0 : index
    %68 = vector.load %arg3[%c0_27, %c0_28] : memref<4x8xi32, #tpu.memory_space<vmem>>, vector<4x8xi32>
    %c264 = arith.constant 264 : index
    %c0_29 = arith.constant 0 : index
    %69 = vector.load %arg0[%c264, %c0_29] : memref<280x32xf32, #tpu.memory_space<vmem>>, vector<1x32xf32>
    %c224 = arith.constant 224 : index
    %c0_30 = arith.constant 0 : index
    %70 = vector.load %arg0[%c224, %c0_30] : memref<280x32xf32, #tpu.memory_space<vmem>>, vector<32x32xf32>
    "tpu.trace_start"() <{level = 10 : i32, message = "bne,eh->bnh"}> : () -> ()
    %cst_31 = arith.constant dense<0.000000e+00> : vector<4x32x32xf32>
    %71 = tpu.matmul %21, %70, %cst_31 {dimension_numbers = #tpu.dot_dimension_numbers<[2], [0], [0, 1], [1], [0, 0, 0, 1, 1, 1], [], []>} : vector<4x32x32xf32>, vector<32x32xf32>, vector<4x32x32xf32> -> vector<4x32x32xf32>
    "tpu.trace_stop"() : () -> ()
    %72 = tpu.iota {dimensions = array<i32: 0>} : vector<32x8xi32>
    %73 = vector.extract_strided_slice %71 {offsets = [0, 0, 0], sizes = [1, 32, 32], strides = [1, 1, 1]} : vector<4x32x32xf32> to vector<1x32x32xf32>
    %74 = vector.shape_cast %73 : vector<1x32x32xf32> to vector<32x32xf32>
    %75 = vector.extract_strided_slice %67 {offsets = [0, 0], sizes = [1, 32], strides = [1, 1]} : vector<4x32xf32> to vector<1x32xf32>
    %76 = vector.broadcast %75 : vector<1x32xf32> to vector<32x32xf32>
    %77 = arith.addf %74, %76 : vector<32x32xf32>
    %cst_32 = arith.constant 0.000000e+00 : f32
    %78 = vector.broadcast %cst_32 : f32 to vector<32x32xf32>
    %79 = arith.maximumf %77, %78 : vector<32x32xf32>
    %80 = vector.broadcast %69 : vector<1x32xf32> to vector<32x32xf32>
    %81 = arith.mulf %79, %80 : vector<32x32xf32>
    %cst_33 = arith.constant dense<0.000000e+00> : vector<32xf32>
    %82 = vector.multi_reduction <add>, %81, %cst_33 [1] : vector<32x32xf32> to vector<32xf32>
    %83 = vector.shape_cast %82 : vector<32xf32> to vector<32x1xf32>
    %84 = vector.extract_strided_slice %68 {offsets = [0, 0], sizes = [1, 8], strides = [1, 1]} : vector<4x8xi32> to vector<1x8xi32>
    %85 = vector.broadcast %84 : vector<1x8xi32> to vector<32x8xi32>
    %86 = arith.cmpi eq, %72, %85 : vector<32x8xi32>
    %cst_34 = arith.constant 0xFF800000 : f32
    %87 = vector.shape_cast %83 : vector<32x1xf32> to vector<32x1xf32>
    %88 = vector.broadcast %87 : vector<32x1xf32> to vector<32x8xf32>
    %89 = vector.broadcast %cst_34 : f32 to vector<32x8xf32>
    %90 = arith.select %86, %88, %89 : vector<32x8xi1>, vector<32x8xf32>
    %cst_35 = arith.constant dense<0xFF800000> : vector<8xf32>
    %91 = vector.multi_reduction <maximumf>, %90, %cst_35 [0] : vector<32x8xf32> to vector<8xf32>
    %92 = vector.shape_cast %91 : vector<8xf32> to vector<1x8xf32>
    %93 = vector.extract_strided_slice %71 {offsets = [1, 0, 0], sizes = [1, 32, 32], strides = [1, 1, 1]} : vector<4x32x32xf32> to vector<1x32x32xf32>
    %94 = vector.shape_cast %93 : vector<1x32x32xf32> to vector<32x32xf32>
    %95 = vector.extract_strided_slice %67 {offsets = [1, 0], sizes = [1, 32], strides = [1, 1]} : vector<4x32xf32> to vector<1x32xf32>
    %96 = vector.broadcast %95 : vector<1x32xf32> to vector<32x32xf32>
    %97 = arith.addf %94, %96 : vector<32x32xf32>
    %cst_36 = arith.constant 0.000000e+00 : f32
    %98 = vector.broadcast %cst_36 : f32 to vector<32x32xf32>
    %99 = arith.maximumf %97, %98 : vector<32x32xf32>
    %100 = vector.broadcast %69 : vector<1x32xf32> to vector<32x32xf32>
    %101 = arith.mulf %99, %100 : vector<32x32xf32>
    %cst_37 = arith.constant dense<0.000000e+00> : vector<32xf32>
    %102 = vector.multi_reduction <add>, %101, %cst_37 [1] : vector<32x32xf32> to vector<32xf32>
    %103 = vector.shape_cast %102 : vector<32xf32> to vector<32x1xf32>
    %104 = vector.extract_strided_slice %68 {offsets = [1, 0], sizes = [1, 8], strides = [1, 1]} : vector<4x8xi32> to vector<1x8xi32>
    %105 = vector.broadcast %104 : vector<1x8xi32> to vector<32x8xi32>
    %106 = arith.cmpi eq, %72, %105 : vector<32x8xi32>
    %cst_38 = arith.constant 0xFF800000 : f32
    %107 = vector.shape_cast %103 : vector<32x1xf32> to vector<32x1xf32>
    %108 = vector.broadcast %107 : vector<32x1xf32> to vector<32x8xf32>
    %109 = vector.broadcast %cst_38 : f32 to vector<32x8xf32>
    %110 = arith.select %106, %108, %109 : vector<32x8xi1>, vector<32x8xf32>
    %cst_39 = arith.constant dense<0xFF800000> : vector<8xf32>
    %111 = vector.multi_reduction <maximumf>, %110, %cst_39 [0] : vector<32x8xf32> to vector<8xf32>
    %112 = vector.shape_cast %111 : vector<8xf32> to vector<1x8xf32>
    %113 = vector.extract_strided_slice %71 {offsets = [2, 0, 0], sizes = [1, 32, 32], strides = [1, 1, 1]} : vector<4x32x32xf32> to vector<1x32x32xf32>
    %114 = vector.shape_cast %113 : vector<1x32x32xf32> to vector<32x32xf32>
    %115 = vector.extract_strided_slice %67 {offsets = [2, 0], sizes = [1, 32], strides = [1, 1]} : vector<4x32xf32> to vector<1x32xf32>
    %116 = vector.broadcast %115 : vector<1x32xf32> to vector<32x32xf32>
    %117 = arith.addf %114, %116 : vector<32x32xf32>
    %cst_40 = arith.constant 0.000000e+00 : f32
    %118 = vector.broadcast %cst_40 : f32 to vector<32x32xf32>
    %119 = arith.maximumf %117, %118 : vector<32x32xf32>
    %120 = vector.broadcast %69 : vector<1x32xf32> to vector<32x32xf32>
    %121 = arith.mulf %119, %120 : vector<32x32xf32>
    %cst_41 = arith.constant dense<0.000000e+00> : vector<32xf32>
    %122 = vector.multi_reduction <add>, %121, %cst_41 [1] : vector<32x32xf32> to vector<32xf32>
    %123 = vector.shape_cast %122 : vector<32xf32> to vector<32x1xf32>
    %124 = vector.extract_strided_slice %68 {offsets = [2, 0], sizes = [1, 8], strides = [1, 1]} : vector<4x8xi32> to vector<1x8xi32>
    %125 = vector.broadcast %124 : vector<1x8xi32> to vector<32x8xi32>
    %126 = arith.cmpi eq, %72, %125 : vector<32x8xi32>
    %cst_42 = arith.constant 0xFF800000 : f32
    %127 = vector.shape_cast %123 : vector<32x1xf32> to vector<32x1xf32>
    %128 = vector.broadcast %127 : vector<32x1xf32> to vector<32x8xf32>
    %129 = vector.broadcast %cst_42 : f32 to vector<32x8xf32>
    %130 = arith.select %126, %128, %129 : vector<32x8xi1>, vector<32x8xf32>
    %cst_43 = arith.constant dense<0xFF800000> : vector<8xf32>
    %131 = vector.multi_reduction <maximumf>, %130, %cst_43 [0] : vector<32x8xf32> to vector<8xf32>
    %132 = vector.shape_cast %131 : vector<8xf32> to vector<1x8xf32>
    %133 = vector.extract_strided_slice %71 {offsets = [3, 0, 0], sizes = [1, 32, 32], strides = [1, 1, 1]} : vector<4x32x32xf32> to vector<1x32x32xf32>
    %134 = vector.shape_cast %133 : vector<1x32x32xf32> to vector<32x32xf32>
    %135 = vector.extract_strided_slice %67 {offsets = [3, 0], sizes = [1, 32], strides = [1, 1]} : vector<4x32xf32> to vector<1x32xf32>
    %136 = vector.broadcast %135 : vector<1x32xf32> to vector<32x32xf32>
    %137 = arith.addf %134, %136 : vector<32x32xf32>
    %cst_44 = arith.constant 0.000000e+00 : f32
    %138 = vector.broadcast %cst_44 : f32 to vector<32x32xf32>
    %139 = arith.maximumf %137, %138 : vector<32x32xf32>
    %140 = vector.broadcast %69 : vector<1x32xf32> to vector<32x32xf32>
    %141 = arith.mulf %139, %140 : vector<32x32xf32>
    %cst_45 = arith.constant dense<0.000000e+00> : vector<32xf32>
    %142 = vector.multi_reduction <add>, %141, %cst_45 [1] : vector<32x32xf32> to vector<32xf32>
    %143 = vector.shape_cast %142 : vector<32xf32> to vector<32x1xf32>
    %144 = vector.extract_strided_slice %68 {offsets = [3, 0], sizes = [1, 8], strides = [1, 1]} : vector<4x8xi32> to vector<1x8xi32>
    %145 = vector.broadcast %144 : vector<1x8xi32> to vector<32x8xi32>
    %146 = arith.cmpi eq, %72, %145 : vector<32x8xi32>
    %cst_46 = arith.constant 0xFF800000 : f32
    %147 = vector.shape_cast %143 : vector<32x1xf32> to vector<32x1xf32>
    %148 = vector.broadcast %147 : vector<32x1xf32> to vector<32x8xf32>
    %149 = vector.broadcast %cst_46 : f32 to vector<32x8xf32>
    %150 = arith.select %146, %148, %149 : vector<32x8xi1>, vector<32x8xf32>
    %cst_47 = arith.constant dense<0xFF800000> : vector<8xf32>
    %151 = vector.multi_reduction <maximumf>, %150, %cst_47 [0] : vector<32x8xf32> to vector<8xf32>
    %152 = vector.shape_cast %151 : vector<8xf32> to vector<1x8xf32>
    %153 = tpu.concatenate %92, %112, %132, %152 in 0 : vector<1x8xf32>, vector<1x8xf32>, vector<1x8xf32>, vector<1x8xf32> -> vector<4x8xf32>
    %154 = tpu.iota {dimensions = array<i32: 1>} : vector<4x8xi32>
    %cst_48 = arith.constant dense<0xFF800000> : vector<4xf32>
    %155 = vector.multi_reduction <maximumf>, %153, %cst_48 [1] : vector<4x8xf32> to vector<4xf32>
    %156 = vector.shape_cast %155 : vector<4xf32> to vector<4x1xf32>
    %157 = vector.broadcast %156 : vector<4x1xf32> to vector<4x8xf32>
    %158 = arith.cmpf oeq, %153, %157 : vector<4x8xf32>
    %c8_i32 = arith.constant 8 : i32
    %159 = vector.broadcast %c8_i32 : i32 to vector<4x8xi32>
    %160 = arith.select %158, %154, %159 : vector<4x8xi1>, vector<4x8xi32>
    %cst_49 = arith.constant dense<2147483647> : vector<4xi32>
    %161 = vector.multi_reduction <minsi>, %160, %cst_49 [1] : vector<4x8xi32> to vector<4xi32>
    %162 = vector.shape_cast %161 : vector<4xi32> to vector<4x1xi32>
    %c7_i32 = arith.constant 7 : i32
    %163 = vector.broadcast %c7_i32 : i32 to vector<4x1xi32>
    %164 = arith.minsi %162, %163 : vector<4x1xi32>
    %165 = vector.broadcast %164 : vector<4x1xi32> to vector<4x8xi32>
    %166 = arith.cmpi eq, %154, %165 : vector<4x8xi32>
    %c0_i32 = arith.constant 0 : i32
    %167 = vector.broadcast %c0_i32 : i32 to vector<4x8xi32>
    %168 = arith.select %166, %68, %167 : vector<4x8xi1>, vector<4x8xi32>
    %cst_50 = arith.constant dense<0> : vector<4xi32>
    %169 = vector.multi_reduction <add>, %168, %cst_50 [1] : vector<4x8xi32> to vector<4xi32>
    %170 = vector.shape_cast %169 : vector<4xi32> to vector<4x1xi32>
    %c272 = arith.constant 272 : index
    %c0_51 = arith.constant 0 : index
    %171 = vector.load %arg0[%c272, %c0_51] : memref<280x32xf32, #tpu.memory_space<vmem>>, vector<1x32xf32>
    %172 = vector.extract_strided_slice %171 {offsets = [0, 0], sizes = [1, 1], strides = [1, 1]} : vector<1x32xf32> to vector<1x1xf32>
    %173 = vector.broadcast %172 : vector<1x1xf32> to vector<4x1xf32>
    %174 = arith.addf %156, %173 : vector<4x1xf32>
    %175 = tpu.iota {dimensions = array<i32: 1>} : vector<4x128xi32>
    %c0_i32_52 = arith.constant 0 : i32
    %176 = vector.broadcast %c0_i32_52 : i32 to vector<4x128xi32>
    %177 = arith.cmpi eq, %175, %176 : vector<4x128xi32>
    %c1_i32 = arith.constant 1 : i32
    %178 = vector.broadcast %c1_i32 : i32 to vector<4x128xi32>
    %179 = arith.cmpi eq, %175, %178 : vector<4x128xi32>
    %180 = arith.sitofp %170 : vector<4x1xi32> to vector<4x1xf32>
    %cst_53 = arith.constant 0.000000e+00 : f32
    %181 = vector.shape_cast %180 : vector<4x1xf32> to vector<4x1xf32>
    %182 = vector.broadcast %181 : vector<4x1xf32> to vector<4x128xf32>
    %183 = vector.broadcast %cst_53 : f32 to vector<4x128xf32>
    %184 = arith.select %179, %182, %183 : vector<4x128xi1>, vector<4x128xf32>
    %185 = vector.shape_cast %174 : vector<4x1xf32> to vector<4x1xf32>
    %186 = vector.broadcast %185 : vector<4x1xf32> to vector<4x128xf32>
    %187 = arith.select %177, %186, %184 : vector<4x128xi1>, vector<4x128xf32>
    %c0_54 = arith.constant 0 : index
    %c0_55 = arith.constant 0 : index
    %188 = vector.load %arg4[%c0_54, %c0_55] : memref<4x128xf32, #tpu.memory_space<vmem>>, vector<4x128xf32>
    tpu.vector_store %arg4[%c0_54, %c0_55], %187 {strides = array<i32>} : memref<4x128xf32, #tpu.memory_space<vmem>>, vector<4x128xf32>,
    return
  }
}

</mosaic_0001>

<bundles_post_ra>
// kernel: qnet_forward.1
= control target key start
LH: loop header
LB: loop body
LE: loop exit
PB: predicated region body
PF: predicated region fallthrough
CT: control target
= control target key end

     0   :  { %v1039_v2 = vmov 3   ;;  %v1040_v3 = vmov 1   ;;  %vm25_vm0 = vcmask 130048   ;;  %v1041_v7 = vmov 2   ;;  %s1044_s30 = smov 12   ;;  %s1045_s9 = smov 4   ;;  %s1494_s0 = inlined_call_operand.vmem [shape: f32[280,32], index: 0, kind: input, shape index: {}]   ;;  %s1495_s2 = inlined_call_operand.vmem [shape: s32[4,4], index: 2, kind: input, shape index: {}]   ;;  %s1496_s1 = inlined_call_operand.vmem [shape: f32[4,32,32], index: 1, kind: input, shape index: {}]   ;;  %s1497_s3 = inlined_call_operand.vmem [shape: s32[4,8], index: 3, kind: input, shape index: {}]   ;;  %s1498_s4 = inlined_call_operand.vmem [shape: f32[4,128], index: 4, kind: output, shape index: {}]  }
   0x1   :  { %v22_v0 = vld [vmem:[%s1494_s0 + $0x28] sm:$0xff]  ;;  %v21_v1 = vld [vmem:[%s1494_s0 + $0x20] sm:$0xff]  ;;  %1026 = vset.pattern.permute.xlu1 %v1039_v2  ;;  %1024 = vset.pattern.permute.xlu0 %v1040_v3  ;;  %v19_v8 = vld [vmem:[%s1494_s0 + $0x10] sm:$0xff]  ;;  %v1042_v12 = vmov 0   ;;  %v416_v14 = vlaneseq  ;;  %v1043_v21 = vmov 0.0   ;;  %vm92_vm2 = vcmask 261120  }
   0x2   :  { %52 = vmatpush.msra.mxu0 %v22_v0  ;;  %v17_v4 = vld [vmem:[%s1494_s0] sm:$0xff]  ;;  %v18_v6 = vld [vmem:[%s1494_s0 + $0x8] sm:$0xff]  ;;  %v20_v9 = vld [vmem:[%s1494_s0 + $0x18] sm:$0xff]  ;;  %1028 = vset.pattern.permute.xlu2 %v1042_v12  ;;  %s1046_s14 = smov 8   ;;  %vm454_vm6 = vcmask 31744   ;;  %vm456_vm7 = vcmask 64512  }
   0x3   :  { %v415_v5 = vld [vmem:[%s1495_s2] sm:$0xf]  ;;  %v1100_v16 = vand.u32 127, %v416_v14  ;;  %v1030_v17 = vld [vmem:[%s1494_s0 + $0x30] ss:$0 sm:$0xff]  ;;  %v72_v33 = vld [vmem:[%s1496_s1 + $0x8] sm:$0xff] }
   0x4   :  { %53 = vmatpush.msra.mxu0 %v21_v1  ;;  %437 = vperm.xlu1 %1026, %v415_v5   ;;  %v71_v29 = vld [vmem:[%s1496_s1] sm:$0xff]  ;;  %v85_v30 = vld [vmem:[%s1496_s1 + $0x70] sm:$0xff]  ;;  %v86_v34 = vld [vmem:[%s1496_s1 + $0x78] sm:$0xff]  ;;  %vm458_vm8 = vcmask 97280   ;;  %vm522_vm10 = vcmask 1041409   ;;  %vm524_vm11 = vcmask 1042434  }
   0x5   :  { %943 = vmatmul.msk.f32.vlgmr.msra.gmra.mxu0 %vm25_vm0, %v17_v4  ;;  %425 = vperm.xlu0 %1024, %v415_v5   ;;  %v73_v37 = vld [vmem:[%s1496_s1 + $0x10] sm:$0xff]  ;;  %v74_v38 = vld [vmem:[%s1496_s1 + $0x18] sm:$0xff]  ;;  %v75_v39 = vld [vmem:[%s1496_s1 + $0x20] sm:$0xff]  ;;  %vm526_vm12 = vcmask 1043459   ;;  %s1048_s18 = smov 32   ;;  %vm544_vm13 = vcmask 523264  }
   0x6   :  { %v76_v40 = vld [vmem:[%s1496_s1 + $0x28] sm:$0xff]  ;;  %v77_v41 = vld [vmem:[%s1496_s1 + $0x30] sm:$0xff]  ;;  %v78_v42 = vld [vmem:[%s1496_s1 + $0x38] sm:$0xff] }
   0x7   :  { %v79_v43 = vld [vmem:[%s1496_s1 + $0x40] sm:$0xff]  ;;  %v80_v44 = vld [vmem:[%s1496_s1 + $0x48] sm:$0xff]  ;;  %v90_v45 = vld [vmem:[%s1494_s0 + $0x50] sm:$0xff] }
   0x8   :  { %v89_v46 = vld [vmem:[%s1494_s0 + $0x48] sm:$0xff]  ;;  %267 = vmatpush.msra.mxu2 %v90_v45  ;;  %v88_v47 = vld [vmem:[%s1494_s0 + $0x40] sm:$0xff]  ;;  %v81_v48 = vld [vmem:[%s1496_s1 + $0x50] sm:$0xff] }
   0x9   :  { %v82_v49 = vld [vmem:[%s1496_s1 + $0x58] sm:$0xff]  ;;  %v83_v51 = vld [vmem:[%s1496_s1 + $0x60] sm:$0xff]  ;;  %v461_v52 = vld [vmem:[%s1494_s0 + $0x68] sm:$0xff] }
   0xa   :  { %268 = vmatpush.msra.mxu2 %v89_v46  ;;  %v87_v50 = vld [vmem:[%s1494_s0 + $0x38] sm:$0xff]  ;;  %v84_v53 = vld [vmem:[%s1496_s1 + $0x68] sm:$0xff]  ;;  %v460_v54 = vld [vmem:[%s1494_s0 + $0x60] sm:$0xff] }
   0xc   :  { %1027 = vset.pattern.permute.xlu1 %v1042_v12  ;;  %269 = vmatpush.msra.mxu2 %v88_v47 }
   0xd   :  { %944 = vmatmul.msk.f32.gmra.mxu0 %vm25_vm0, %v18_v6  ;;  %1025 = vset.pattern.permute.xlu0 %v1041_v7 }
   0xe   :  { %431 = vperm.xlu0 %1025, %v415_v5   ;;  %419 = vperm.xlu1 %1027, %v415_v5  }
   0xf   :  { %270 = vmatpush.msra.mxu2 %v87_v50 }
  0x15   :  { %945 = vmatmul.msk.f32.gmra.mxu0 %vm25_vm0, %v19_v8 }
  0x16   :  { %1029 = vset.pattern.permute.xlu0 %v1042_v12 }
  0x1d   :  { %946 = vmatmul.msk.f32.gmra.mxu0 %vm25_vm0, %v20_v9 }
  0x76   :  { %v438_v15 = vpop.permute.xlu1 %437 }
  0x77   :  { %vm439_vm1 = vcmp.eq.s32.totalorder %v1100_v16, %v438_v15  ;;  %v426_v31 = vpop.permute.xlu0 %425  ;;  %v1227_v15 = vld [vmem:[%s1494_s0 + $0xf8] sm:$0xff] }
  0x78   :  { %v982_v22 = vsel %vm439_vm1, 1.0, %v1043_v21  ;;  %vm427_vm3 = vcmp.eq.s32.totalorder %v1100_v16, %v426_v31  ;;  %634 = vmatpush.msrb.mxu0 %v1227_v15 }
  0x79   :  { %451 = vrot.lane.b32.xlu1 %v982_v22, %s1044_s30  ;;  %v980_v32 = vsel %vm427_vm3, 1.0, %v1043_v21  ;;  %v1246_v22 = vld [vmem:[%s1494_s0 + $0xe0] sm:$0xff] }
  0x7a   :  { %443 = vrot.lane.b32.xlu2 %v980_v32, %s1045_s9 }
  0x80   :  { %v432_v35 = vpop.permute.xlu0 %431  ;;  %v420_v59 = vpop.permute.xlu1 %419 }
  0x81   :  { %vm433_vm4 = vcmp.eq.s32.totalorder %v1100_v16, %v432_v35  ;;  %vm421_vm5 = vcmp.eq.s32.totalorder %v1100_v16, %v420_v59 }
  0x82   :  { %v55_v10 = vpop.f32.mrf.mxu0  ;;  %v981_v36 = vsel %vm433_vm4, 1.0, %v1043_v21  ;;  %v979_v60 = vsel %vm421_vm5, 1.0, %v1043_v21 }
  0x83   :  { %v1114_v25 = vadd.f32 %v1030_v17, %v55_v10  ;;  %447 = vrot.lane.b32.xlu2 %v981_v36, %s1046_s14 }
  0x85   :  { %v67_v28 = vmax.f32 %v1114_v25, 0.0 }
  0x8a   :  { %v58_v11 = vpop.f32.mrf.mxu0 }
  0x8b   :  { %v1111_v23 = vadd.f32 %v1030_v17, %v58_v11 }
  0x8d   :  { %v68_v27 = vmax.f32 %v1111_v23, 0.0 }
  0x92   :  { %v61_v13 = vpop.f32.mrf.mxu0 }
  0x93   :  { %v1106_v19 = vadd.f32 %v1030_v17, %v61_v13 }
  0x95   :  { %v69_v26 = vmax.f32 %v1106_v19, 0.0 }
  0x9a   :  { %v64_v18 = vpop.f32.mrf.mxu0 }
  0x9b   :  { %v1108_v20 = vadd.f32 %v1030_v17, %v64_v18  ;;  %v1233_v17 = vld [vmem:[%s1494_s0 + $0xf0] sm:$0xff]  ;;  %v1239_v18 = vld [vmem:[%s1494_s0 + $0xe8] sm:$0xff] }
  0x9c   :  { %635 = vmatpush.msrb.mxu0 %v1233_v17 }
  0x9d   :  { %v70_v24 = vmax.f32 %v1108_v20, 0.0 }
  0x9e   :  { %636 = vmatpush.msrb.mxu0 %v1239_v18 }
  0x9f   :  { %153 = vmatpush.msra.mxu1 %v70_v24  ;;  %1002 = vmatpush.msra.mxu3 %v70_v24  ;;  %v491_v24 = vld [vmem:[%s1494_s0 + $0x90] sm:$0xff] }
  0xa0   :  { %637 = vmatpush.msrb.mxu0 %v1246_v22 }
  0xa1   :  { %154 = vmatpush.msra.mxu1 %v69_v26  ;;  %1003 = vmatpush.msra.mxu3 %v69_v26  ;;  %v490_v26 = vld [vmem:[%s1494_s0 + $0x88] sm:$0xff] }
  0xa3   :  { %155 = vmatpush.msra.mxu1 %v68_v27  ;;  %1004 = vmatpush.msra.mxu3 %v68_v27  ;;  %v489_v27 = vld [vmem:[%s1494_s0 + $0x80] sm:$0xff] }
  0xa5   :  { %156 = vmatpush.msra.mxu1 %v67_v28  ;;  %1005 = vmatpush.msra.mxu3 %v67_v28  ;;  %v488_v28 = vld [vmem:[%s1494_s0 + $0x78] sm:$0xff] }
  0xa6   :  { %947 = vmatmul.msk.f32.vlgmr.msra.gmra.mxu1 %vm92_vm2, %v71_v29  ;;  %961 = vmatmul.msk.f32.vlgmr.msra.gmra.mxu3 %vm92_vm2, %v85_v30  ;;  %v1264_v29 = vld [vmem:[%s1494_s0 + $0x58] ss:$0 sm:$0xff] }
  0xa7   :  { %1006 = vmatpush.msrb.mxu3 %v90_v45 }
  0xa9   :  { %1007 = vmatpush.msrb.mxu3 %v89_v46  ;;  %v1032_v46 = vld [vmem:[%s1494_s0 + $0x70] ss:$0 sm:$0xff] }
  0xab   :  { %1008 = vmatpush.msrb.mxu3 %v88_v47 }
  0xad   :  { %1009 = vmatpush.msrb.mxu3 %v87_v50 }
  0xae   :  { %948 = vmatmul.msk.f32.gmra.mxu1 %vm92_vm2, %v72_v33  ;;  %962 = vmatmul.msk.f32.gmra.mxu3 %vm92_vm2, %v86_v34 }
  0xaf   :  { %481 = vmatpush.msra.mxu3 %v461_v52 }
  0xb1   :  { %482 = vmatpush.msra.mxu3 %v460_v54 }
  0xb6   :  { %949 = vmatmul.msk.f32.gmra.mxu1 %vm92_vm2, %v73_v37 }
  0xbe   :  { %950 = vmatmul.msk.f32.gmra.mxu1 %vm92_vm2, %v74_v38 }
  0xc6   :  { %951 = vmatmul.msk.f32.gmra.mxu1 %vm92_vm2, %v75_v39 }
  0xce   :  { %952 = vmatmul.msk.f32.gmra.mxu1 %vm92_vm2, %v76_v40 }
  0xd4   :  { %v444_v56 = vpop.permute.xlu2 %443 }
  0xd5   :  { %v455_v62 = vsel %vm454_vm6, %v979_v60, %v444_v56 }
  0xd6   :  { %953 = vmatmul.msk.f32.gmra.mxu1 %vm92_vm2, %v77_v41 }
  0xdd   :  { %v448_v63 = vpop.permute.xlu2 %447 }
  0xde   :  { %954 = vmatmul.msk.f32.gmra.mxu1 %vm92_vm2, %v78_v42  ;;  %v457_v1 = vsel %vm456_vm7, %v455_v62, %v448_v63 }
  0xe6   :  { %955 = vmatmul.msk.f32.gmra.mxu1 %vm92_vm2, %v79_v43 }
  0xeb   :  { %v452_v2 = vpop.permute.xlu1 %451 }
  0xec   :  { %v459_v3 = vsel %vm458_vm8, %v457_v1, %v452_v2 }
  0xee   :  { %956 = vmatmul.msk.f32.gmra.mxu1 %vm92_vm2, %v80_v44 }
  0xf6   :  { %957 = vmatmul.msk.f32.gmra.mxu1 %vm92_vm2, %v81_v48 }
  0xfe   :  { %958 = vmatmul.msk.f32.gmra.mxu1 %vm92_vm2, %v82_v49 }
 0x106   :  { %959 = vmatmul.msk.f32.gmra.mxu1 %vm92_vm2, %v83_v51 }
 0x10e   :  { %960 = vmatmul.msk.f32.gmra.mxu1 %vm92_vm2, %v84_v53 }
 0x123   :  { %v158_v55 = vpop.f32.mrf.mxu1 }
 0x124   :  { %963 = vmatmul.msk.f32.vlgmr.msra.gmra.mxu2 %vm92_vm2, %v158_v55 }
 0x129   :  { %v200_v57 = vpop.f32.mrf.mxu3 }
 0x12a   :  { %977 = vmatmul.msk.f32.vlgmr.msrb.gmra.mxu3 %vm92_vm2, %v200_v57 }
 0x12b   :  { %v161_v58 = vpop.f32.mrf.mxu1  ;;  %509 = vmatpush.msrb.mxu3 %v491_v24 }
 0x12c   :  { %964 = vmatmul.msk.f32.gmra.mxu2 %vm92_vm2, %v161_v58 }
 0x12d   :  { %510 = vmatpush.msrb.mxu3 %v490_v26 }
 0x12f   :  { %511 = vmatpush.msrb.mxu3 %v489_v27 }
 0x131   :  { %v203_v61 = vpop.f32.mrf.mxu3  ;;  %512 = vmatpush.msrb.mxu3 %v488_v28 }
 0x132   :  { %978 = vmatmul.msk.f32.gmra.mxu3 %vm92_vm2, %v203_v61 }
 0x133   :  { %v164_v0 = vpop.f32.mrf.mxu1 }
 0x134   :  { %965 = vmatmul.msk.f32.gmra.mxu2 %vm92_vm2, %v164_v0 }
 0x13a   :  { %983 = vmatmul.msk.f32.vlgmr.msra.gmra.mxu3 %vm25_vm0, %v459_v3 }
 0x13b   :  { %v167_v4 = vpop.f32.mrf.mxu1 }
 0x13c   :  { %966 = vmatmul.msk.f32.gmra.mxu2 %vm92_vm2, %v167_v4 }
 0x143   :  { %v170_v5 = vpop.f32.mrf.mxu1 }
 0x144   :  { %967 = vmatmul.msk.f32.gmra.mxu2 %vm92_vm2, %v170_v5 }
 0x14b   :  { %v173_v6 = vpop.f32.mrf.mxu1 }
 0x14c   :  { %968 = vmatmul.msk.f32.gmra.mxu2 %vm92_vm2, %v173_v6 }
 0x153   :  { %v176_v7 = vpop.f32.mrf.mxu1 }
 0x154   :  { %969 = vmatmul.msk.f32.gmra.mxu2 %vm92_vm2, %v176_v7 }
 0x15b   :  { %v179_v8 = vpop.f32.mrf.mxu1 }
 0x15c   :  { %970 = vmatmul.msk.f32.gmra.mxu2 %vm92_vm2, %v179_v8  ;;  %v1047_v8 = vmov 32.0  }
 0x15d   :  { %1037 = vrcp.f32 %v1047_v8 }
 0x163   :  { %v182_v9 = vpop.f32.mrf.mxu1 }
 0x164   :  { %971 = vmatmul.msk.f32.gmra.mxu2 %vm92_vm2, %v182_v9 }
 0x16b   :  { %v185_v10 = vpop.f32.mrf.mxu1 }
 0x16c   :  { %972 = vmatmul.msk.f32.gmra.mxu2 %vm92_vm2, %v185_v10 }
 0x173   :  { %v188_v11 = vpop.f32.mrf.mxu1 }
 0x174   :  { %973 = vmatmul.msk.f32.gmra.mxu2 %vm92_vm2, %v188_v11 }
 0x17b   :  { %v191_v12 = vpop.f32.mrf.mxu1 }
 0x17c   :  { %974 = vmatmul.msk.f32.gmra.mxu2 %vm92_vm2, %v191_v12 }
 0x183   :  { %v194_v13 = vpop.f32.mrf.mxu1 }
 0x184   :  { %975 = vmatmul.msk.f32.gmra.mxu2 %vm92_vm2, %v194_v13  ;;  %v1038_v13 = vpop.eup %1037 }
 0x185   :  { %vm409_vm9 = vweird.f32 %v1038_v13 }
 0x18b   :  { %v197_v21 = vpop.f32.mrf.mxu1 }
 0x18c   :  { %976 = vmatmul.msk.f32.gmra.mxu2 %vm92_vm2, %v197_v21 }
 0x1a7   :  { %v272_v30 = vpop.f32.mrf.mxu2 }
 0x1a8   :  { %v273_v31 = vadd.f32 %v1264_v29, %v272_v30  ;;  %v405_v30 = vmul.f32 32.0, %v1038_v13 }
 0x1aa   :  { %v320_v32 = vadd.f32 %v273_v31, %v1114_v25 }
 0x1ac   :  { %v336_v33 = vmax.f32 %v320_v32, 0.0 }
 0x1ad   :  { %v1268_v34 = vpop.f32.mrf.mxu3 }
 0x1ae   :  { %986 = vmatmul.msk.f32.vlgmr.msrb.gmra.mxu0 %vm92_vm2, %v336_v33  ;;  %v352_v40 = vsel %vm92_vm2, %v336_v33, 0.0 }
 0x1af   :  { %v275_v35 = vpop.f32.mrf.mxu2 }
 0x1b0   :  { %v276_v36 = vadd.f32 %v1264_v29, %v275_v35  ;;  %v406_v35 = vsub.f32 1.0, %v405_v30 }
 0x1b2   :  { %v321_v37 = vadd.f32 %v276_v36, %v1111_v23 }
 0x1b4   :  { %v337_v38 = vmax.f32 %v321_v37, 0.0 }
 0x1b5   :  { %v1273_v39 = vpop.f32.mrf.mxu3 }
 0x1b6   :  { %v353_v41 = vsel %vm92_vm2, %v337_v38, 0.0  ;;  %987 = vmatmul.msk.f32.gmra.mxu0 %vm92_vm2, %v337_v38 }
 0x1b7   :  { %v354_v42 = vadd.f32 %v353_v41, %v352_v40  ;;  %v278_v43 = vpop.f32.mrf.mxu2 }
 0x1b8   :  { %v279_v44 = vadd.f32 %v1264_v29, %v278_v43  ;;  %v407_v43 = vmul.f32 %v1038_v13, %v406_v35 }
 0x1ba   :  { %v322_v45 = vadd.f32 %v279_v44, %v1106_v19 }
 0x1bc   :  { %v338_v47 = vmax.f32 %v322_v45, 0.0 }
 0x1bd   :  { %v484_v48 = vpop.f32.mrf.mxu3 }
 0x1be   :  { %v355_v49 = vsel %vm92_vm2, %v338_v47, 0.0  ;;  %v485_v50 = vadd.f32 %v1032_v46, %v484_v48  ;;  %988 = vmatmul.msk.f32.gmra.mxu0 %vm92_vm2, %v338_v47  ;;  %v408_v48 = vadd.f32 %v1038_v13, %v407_v43 }
 0x1bf   :  { %v356_v51 = vadd.f32 %v355_v49, %v354_v42  ;;  %v281_v52 = vpop.f32.mrf.mxu2 }
 0x1c0   :  { %v487_v53 = vmax.f32 %v485_v50, 0.0  ;;  %v282_v54 = vadd.f32 %v1264_v29, %v281_v52 }
 0x1c2   :  { %v323_v55 = vadd.f32 %v282_v54, %v1108_v20  ;;  %984 = vmatmul.msk.f32.vlgmr.msrb.gmra.mxu3 %vm92_vm2, %v487_v53 }
 0x1c4   :  { %v339_v56 = vmax.f32 %v323_v55, 0.0  ;;  %v410_v55 = vsel %vm409_vm9, %v1038_v13, %v408_v48 }
 0x1c6   :  { %v357_v57 = vsel %vm92_vm2, %v339_v56, 0.0  ;;  %989 = vmatmul.msk.f32.gmra.mxu0 %vm92_vm2, %v339_v56 }
 0x1c7   :  { %v358_v58 = vadd.f32 %v357_v57, %v356_v51  ;;  %v284_v59 = vpop.f32.mrf.mxu2 }
 0x1c8   :  { %v285_v60 = vadd.f32 %v1264_v29, %v284_v59 }
 0x1c9   :  { %v359_v11 = vrot.slane %v358_v58, 4 }
 0x1ca   :  { %v324_v61 = vadd.f32 %v285_v60, %v1114_v25 }
 0x1cb   :  { %v360_v27 = vadd.f32 %v359_v11, %v358_v58 }
 0x1cc   :  { %v340_v62 = vmax.f32 %v324_v61, 0.0 }
 0x1cd   :  { %v361_v32 = vrot.slane %v360_v27, 2 }
 0x1ce   :  { %990 = vmatmul.msk.f32.gmra.mxu0 %vm92_vm2, %v340_v62  ;;  %v365_v3 = vsel %vm92_vm2, %v340_v62, 0.0 }
 0x1cf   :  { %v287_v63 = vpop.f32.mrf.mxu2  ;;  %v362_v40 = vadd.f32 %v361_v32, %v360_v27 }
 0x1d0   :  { %v288_v0 = vadd.f32 %v1264_v29, %v287_v63 }
 0x1d1   :  { %v363_v46 = vrot.slane %v362_v40, 1 }
 0x1d2   :  { %v325_v1 = vadd.f32 %v288_v0, %v1111_v23 }
 0x1d3   :  { %v364_v52 = vadd.f32 %v363_v46, %v362_v40 }
 0x1d4   :  { %v341_v2 = vmax.f32 %v325_v1, 0.0 }
 0x1d5   :  { %v411_v58 = vmul.f32 %v410_v55, %v364_v52 }
 0x1d6   :  { %v366_v4 = vsel %vm92_vm2, %v341_v2, 0.0  ;;  %991 = vmatmul.msk.f32.gmra.mxu0 %vm92_vm2, %v341_v2 }
 0x1d7   :  { %v367_v5 = vadd.f32 %v366_v4, %v365_v3  ;;  %v290_v6 = vpop.f32.mrf.mxu2 }
 0x1d8   :  { %v291_v7 = vadd.f32 %v1264_v29, %v290_v6 }
 0x1da   :  { %v326_v9 = vadd.f32 %v291_v7, %v1106_v19 }
 0x1dc   :  { %v342_v10 = vmax.f32 %v326_v9, 0.0 }
 0x1de   :  { %v368_v12 = vsel %vm92_vm2, %v342_v10, 0.0  ;;  %992 = vmatmul.msk.f32.gmra.mxu0 %vm92_vm2, %v342_v10 }
 0x1df   :  { %v369_v21 = vadd.f32 %v368_v12, %v367_v5  ;;  %v293_v24 = vpop.f32.mrf.mxu2 }
 0x1e0   :  { %v294_v26 = vadd.f32 %v1264_v29, %v293_v24 }
 0x1e2   :  { %v327_v28 = vadd.f32 %v294_v26, %v1108_v20  ;;  %v315_v26 = vadd.f32 %v1264_v29, %v1268_v34 }
 0x1e4   :  { %v343_v31 = vmax.f32 %v327_v28, 0.0  ;;  %v318_v28 = vadd.f32 %v1264_v29, %v1273_v39 }
 0x1e6   :  { %v370_v33 = vsel %vm92_vm2, %v343_v31, 0.0  ;;  %993 = vmatmul.msk.f32.gmra.mxu0 %vm92_vm2, %v343_v31 }
 0x1e7   :  { %v371_v36 = vadd.f32 %v370_v33, %v369_v21  ;;  %v296_v37 = vpop.f32.mrf.mxu2  ;;  %v1335_v33 = vadd.f32 %v315_v26, %v1106_v19  ;;  %v1391_v26 = vld [vmem:[%s1494_s0 + $0x108] ss:$0 sm:$0xff] }
 0x1e8   :  { %v297_v38 = vadd.f32 %v1264_v29, %v296_v37  ;;  %v335_v37 = vadd.f32 %v318_v28, %v1108_v20 }
 0x1e9   :  { %v372_v41 = vrot.slane %v371_v36, 4  ;;  %v350_v39 = vmax.f32 %v1335_v33, 0.0 }
 0x1ea   :  { %v328_v42 = vadd.f32 %v297_v38, %v1114_v25 }
 0x1eb   :  { %v373_v44 = vadd.f32 %v372_v41, %v371_v36 }
 0x1ec   :  { %v344_v45 = vmax.f32 %v328_v42, 0.0  ;;  %v351_v42 = vmax.f32 %v335_v37, 0.0 }
 0x1ed   :  { %v374_v47 = vrot.slane %v373_v44, 2 }
 0x1ee   :  { %994 = vmatmul.msk.f32.gmra.mxu0 %vm92_vm2, %v344_v45  ;;  %v378_v60 = vsel %vm92_vm2, %v344_v45, 0.0  ;;  %v394_v45 = vsel %vm92_vm2, %v350_v39, 0.0  ;;  %v396_v46 = vsel %vm92_vm2, %v351_v42, 0.0 }
 0x1ef   :  { %v375_v49 = vadd.f32 %v374_v47, %v373_v44  ;;  %v299_v50 = vpop.f32.mrf.mxu2 }
 0x1f0   :  { %v300_v51 = vadd.f32 %v1264_v29, %v299_v50 }
 0x1f1   :  { %v376_v53 = vrot.slane %v375_v49, 1 }
 0x1f2   :  { %v329_v54 = vadd.f32 %v300_v51, %v1111_v23 }
 0x1f3   :  { %v377_v56 = vadd.f32 %v376_v53, %v375_v49 }
 0x1f4   :  { %v345_v57 = vmax.f32 %v329_v54, 0.0 }
 0x1f5   :  { %v412_v59 = vmul.f32 %v410_v55, %v377_v56  ;;  %v1033_v56 = vld [vmem:[%s1494_s0 + $0x98] ss:$0 sm:$0xff] }
 0x1f6   :  { %v379_v61 = vsel %vm92_vm2, %v345_v57, 0.0  ;;  %995 = vmatmul.msk.f32.gmra.mxu0 %vm92_vm2, %v345_v57 }
 0x1f7   :  { %v380_v62 = vadd.f32 %v379_v61, %v378_v60  ;;  %v302_v63 = vpop.f32.mrf.mxu2  ;;  %v523_v0 = vsel %vm522_vm10, %v412_v59, %v411_v58  ;;  %v541_v60 = vld [vmem:[%s1494_s0 + $0xd8] sm:$0xff]  ;;  %v540_v61 = vld [vmem:[%s1494_s0 + $0xd0] sm:$0xff] }
 0x1f8   :  { %v303_v1 = vadd.f32 %v1264_v29, %v302_v63  ;;  %556 = vmatpush.msra.mxu3 %v541_v60  ;;  %v537_v63 = vld [vmem:[%s1494_s0 + $0xb8] sm:$0xff] }
 0x1fa   :  { %v330_v2 = vadd.f32 %v303_v1, %v1106_v19  ;;  %557 = vmatpush.msra.mxu3 %v540_v61  ;;  %v535_v1 = vld [vmem:[%s1494_s0 + $0xa8] sm:$0xff] }
 0x1fc   :  { %v346_v3 = vmax.f32 %v330_v2, 0.0  ;;  %v534_v2 = vld [vmem:[%s1494_s0 + $0xa0] sm:$0xff] }
 0x1fe   :  { %v381_v4 = vsel %vm92_vm2, %v346_v3, 0.0  ;;  %996 = vmatmul.msk.f32.gmra.mxu0 %vm92_vm2, %v346_v3 }
 0x1ff   :  { %v382_v5 = vadd.f32 %v381_v4, %v380_v62  ;;  %v305_v6 = vpop.f32.mrf.mxu2  ;;  %v538_v62 = vld [vmem:[%s1494_s0 + $0xc0] sm:$0xff] }
 0x200   :  { %v306_v7 = vadd.f32 %v1264_v29, %v305_v6 }
 0x202   :  { %v1320_v8 = vadd.f32 %v306_v7, %v1108_v20 }
 0x204   :  { %v347_v9 = vmax.f32 %v1320_v8, 0.0  ;;  %v1034_v8 = vld [vmem:[%s1494_s0 + $0x100] ss:$0 sm:$0xff] }
 0x206   :  { %v383_v10 = vsel %vm92_vm2, %v347_v9, 0.0 }
 0x207   :  { %v384_v11 = vadd.f32 %v383_v10, %v382_v5  ;;  %v308_v12 = vpop.f32.mrf.mxu2 }
 0x208   :  { %v309_v21 = vadd.f32 %v1264_v29, %v308_v12 }
 0x209   :  { %v385_v13 = vrot.slane %v384_v11, 4 }
 0x20a   :  { %v1332_v30 = vadd.f32 %v309_v21, %v1114_v25 }
 0x20b   :  { %v386_v24 = vadd.f32 %v385_v13, %v384_v11 }
 0x20c   :  { %v348_v38 = vmax.f32 %v1332_v30, 0.0 }
 0x20d   :  { %v387_v27 = vrot.slane %v386_v24, 2 }
 0x20e   :  { %v391_v43 = vsel %vm92_vm2, %v348_v38, 0.0 }
 0x20f   :  { %v388_v31 = vadd.f32 %v387_v27, %v386_v24  ;;  %v311_v32 = vpop.f32.mrf.mxu2 }
 0x210   :  { %v312_v35 = vadd.f32 %v1264_v29, %v311_v32 }
 0x211   :  { %v389_v36 = vrot.slane %v388_v31, 1 }
 0x212   :  { %v333_v34 = vadd.f32 %v312_v35, %v1111_v23 }
 0x213   :  { %v390_v40 = vadd.f32 %v389_v36, %v388_v31 }
 0x214   :  { %v349_v41 = vmax.f32 %v333_v34, 0.0 }
 0x215   :  { %v413_v25 = vmul.f32 %v410_v55, %v390_v40 }
 0x216   :  { %v392_v19 = vsel %vm92_vm2, %v349_v41, 0.0 }
 0x217   :  { %v393_v44 = vadd.f32 %v392_v19, %v391_v43  ;;  %v525_v29 = vsel %vm524_vm11, %v413_v25, %v523_v0  ;;  %v536_v0 = vld [vmem:[%s1494_s0 + $0xb0] sm:$0xff] }
 0x219   :  { %v395_v20 = vadd.f32 %v394_v45, %v393_v44 }
 0x21b   :  { %v397_v47 = vadd.f32 %v396_v46, %v395_v20 }
 0x21d   :  { %v398_v23 = vrot.slane %v397_v47, 4 }
 0x21f   :  { %v399_v48 = vadd.f32 %v398_v23, %v397_v47 }
 0x221   :  { %v400_v49 = vrot.slane %v399_v48, 2 }
 0x223   :  { %v401_v50 = vadd.f32 %v400_v49, %v399_v48 }
 0x225   :  { %v402_v51 = vrot.slane %v401_v50, 1 }
 0x227   :  { %v403_v52 = vadd.f32 %v402_v51, %v401_v50 }
 0x229   :  { %v414_v53 = vmul.f32 %v410_v55, %v403_v52  ;;  %v539_v55 = vld [vmem:[%s1494_s0 + $0xc8] sm:$0xff] }
 0x22a   :  { %558 = vmatpush.msra.mxu3 %v539_v55 }
 0x22b   :  { %v527_v54 = vsel %vm526_vm12, %v414_v53, %v525_v29 }
 0x22c   :  { %559 = vmatpush.msra.mxu3 %v538_v62 }
 0x22e   :  { %560 = vmatpush.msra.mxu3 %v537_v63 }
 0x230   :  { %561 = vmatpush.msra.mxu3 %v536_v0 }
 0x232   :  { %562 = vmatpush.msra.mxu3 %v535_v1 }
 0x234   :  { %563 = vmatpush.msra.mxu3 %v534_v2 }
 0x236   :  { %1010 = vmatpush.msrb.mxu3 %v1227_v15  ;;  %v639_v15 = vpop.f32.mrf.mxu0 }
 0x238   :  { %1011 = vmatpush.msrb.mxu3 %v1233_v17 }
 0x23a   :  { %1012 = vmatpush.msrb.mxu3 %v1239_v18 }
 0x23c   :  { %1013 = vmatpush.msrb.mxu3 %v1246_v22 }
 0x23e   :  { %v642_v17 = vpop.f32.mrf.mxu0 }
 0x245   :  { %v514_v57 = vpop.f32.mrf.mxu3 }
 0x246   :  { %v515_v58 = vadd.f32 %v1033_v56, %v514_v57  ;;  %v645_v18 = vpop.f32.mrf.mxu0 }
 0x248   :  { %v517_v59 = vmax.f32 %v515_v58, 0.0 }
 0x24a   :  { %530 = vrot.lane.b32.xlu2 %v517_v59, %s1048_s18 }
 0x24e   :  { %v648_v22 = vpop.f32.mrf.mxu0 }
 0x256   :  { %v651_v5 = vpop.f32.mrf.mxu0 }
 0x25e   :  { %v654_v6 = vpop.f32.mrf.mxu0 }
 0x266   :  { %v657_v7 = vpop.f32.mrf.mxu0 }
 0x26e   :  { %v660_v10 = vpop.f32.mrf.mxu0 }
 0x276   :  { %v663_v12 = vpop.f32.mrf.mxu0 }
 0x27e   :  { %v666_v29 = vpop.f32.mrf.mxu0 }
 0x286   :  { %v669_v57 = vpop.f32.mrf.mxu0 }
 0x2a4   :  { %v531_v3 = vpop.permute.xlu2 %530 }
 0x2a5   :  { %v533_v4 = vsel %vm92_vm2, %v527_v54, %v531_v3 }
 0x2a6   :  { %985 = vmatmul.msk.f32.vlgmr.msra.gmra.mxu3 %vm544_vm13, %v533_v4 }
 0x2ae   :  { %997 = vmatmul.msk.f32.vlgmr.msrb.gmra.mxu3 %vm92_vm2, %v347_v9 }
 0x2b6   :  { %998 = vmatmul.msk.f32.gmra.mxu3 %vm92_vm2, %v348_v38 }
 0x2be   :  { %999 = vmatmul.msk.f32.gmra.mxu3 %vm92_vm2, %v349_v41 }
 0x2c6   :  { %1000 = vmatmul.msk.f32.gmra.mxu3 %vm92_vm2, %v350_v39 }
 0x2ce   :  { %1001 = vmatmul.msk.f32.gmra.mxu3 %vm92_vm2, %v351_v42 }
 0x329   :  { %v565_v9 = vpop.f32.mrf.mxu3 }
 0x32a   :  { %v566_v11 = vadd.f32 %v1034_v8, %v565_v9 }
 0x32c   :  { %v692_v13 = vperm.slane %v566_v11, 0  ;;  %v740_v21 = vperm.slane %v566_v11, 1  ;;  %v787_v39 = vperm.slane %v566_v11, 2 }
 0x32e   :  { %v695_v24 = vadd.f32 %v692_v13, %v645_v18  ;;  %v694_v27 = vadd.f32 %v692_v13, %v642_v17  ;;  %v693_v28 = vadd.f32 %v692_v13, %v639_v15  ;;  %v696_v30 = vadd.f32 %v692_v13, %v648_v22 }
 0x32f   :  { %v742_v35 = vadd.f32 %v740_v21, %v654_v6  ;;  %v741_v37 = vadd.f32 %v740_v21, %v651_v5  ;;  %v743_v46 = vadd.f32 %v740_v21, %v657_v7  ;;  %v788_v47 = vadd.f32 %v787_v39, %v663_v12 }
 0x330   :  { %v699_v31 = vmax.f32 %v695_v24, 0.0  ;;  %v698_v32 = vmax.f32 %v694_v27, 0.0  ;;  %v697_v33 = vmax.f32 %v693_v28, 0.0  ;;  %v700_v41 = vmax.f32 %v696_v30, 0.0 }
 0x331   :  { %v672_v36 = vpop.f32.mrf.mxu3  ;;  %v746_v19 = vmax.f32 %v742_v35, 0.0  ;;  %v745_v44 = vmax.f32 %v741_v37, 0.0  ;;  %v744_v49 = vadd.f32 %v740_v21, %v660_v10  ;;  %v747_v52 = vmax.f32 %v743_v46, 0.0 }
 0x332   :  { %v704_v38 = vmul.f32 %v1391_v26, %v699_v31  ;;  %v703_v34 = vmul.f32 %v1391_v26, %v698_v32  ;;  %v702_v40 = vmul.f32 %v1391_v26, %v697_v33  ;;  %v705_v45 = vmul.f32 %v1391_v26, %v700_v41 }
 0x333   :  { %v750_v20 = vmul.f32 %v1391_v26, %v746_v19  ;;  %v749_v48 = vmul.f32 %v1391_v26, %v745_v44  ;;  %v792_v53 = vmax.f32 %v788_v47, 0.0  ;;  %v748_v56 = vmax.f32 %v744_v49, 0.0  ;;  %v1431_v44 = vld [vmem:[%s1497_s3] sm:$0xf] }
 0x334   :  { %v712_v25 = vsel %vm92_vm2, %v704_v38, 0.0  ;;  %v709_v42 = vsel %vm92_vm2, %v703_v34, 0.0  ;;  %v706_v43 = vsel %vm92_vm2, %v702_v40, 0.0  ;;  %v715_v50 = vsel %vm92_vm2, %v705_v45, 0.0 }
 0x335   :  { %713 = vadd.xlane.f32.xlu2 %v712_v25  ;;  %710 = vadd.xlane.f32.xlu1 %v709_v42  ;;  %v756_v51 = vsel %vm92_vm2, %v750_v20, 0.0  ;;  %v753_v54 = vsel %vm92_vm2, %v749_v48, 0.0  ;;  %v791_v58 = vadd.f32 %v787_v39, %v672_v36  ;;  %v751_v59 = vmul.f32 %v1391_v26, %v747_v52 }
 0x336   :  { %707 = vadd.xlane.f32.xlu0 %v706_v43  ;;  %v796_v60 = vmul.f32 %v1391_v26, %v792_v53  ;;  %v789_v61 = vadd.f32 %v787_v39, %v666_v29  ;;  %v752_v62 = vmul.f32 %v1391_v26, %v748_v56  ;;  %v790_v63 = vadd.f32 %v787_v39, %v669_v57 }
 0x337   :  { %v795_v0 = vmax.f32 %v791_v58, 0.0  ;;  %v759_v1 = vsel %vm92_vm2, %v751_v59, 0.0  ;;  %v834_v17 = vperm.slane %v566_v11, 3  ;;  %v1426_v43 = vshrl.u32 %v416_v14, 7 }
 0x338   :  { %v800_v2 = vsel %vm92_vm2, %v796_v60, 0.0  ;;  %v793_v3 = vmax.f32 %v789_v61, 0.0  ;;  %v762_v4 = vsel %vm92_vm2, %v752_v62, 0.0  ;;  %v794_v15 = vmax.f32 %v790_v63, 0.0 }
 0x339   :  { %v675_v23 = vpop.f32.mrf.mxu3  ;;  %v799_v5 = vmul.f32 %v1391_v26, %v795_v0  ;;  %v1434_v29 = vadd.s32 16, %v1426_v43  ;;  %v1438_v45 = vadd.s32 8, %v1426_v43  ;;  %v1441_v20 = vadd.s32 24, %v1426_v43 }
 0x33a   :  { %v835_v18 = vadd.f32 %v834_v17, %v675_v23  ;;  %v797_v22 = vmul.f32 %v1391_v26, %v793_v3  ;;  %v798_v10 = vmul.f32 %v1391_v26, %v794_v15  ;;  %v765_v14 = vperm.slane %v1431_v44, 1 }
 0x33b   :  { %v809_v21 = vsel %vm92_vm2, %v799_v5, 0.0  ;;  %v812_v47 = vperm.slane %v1431_v44, 2 }
 0x33c   :  { %v839_v9 = vmax.f32 %v835_v18, 0.0  ;;  %v803_v13 = vsel %vm92_vm2, %v797_v22, 0.0  ;;  %v806_v11 = vsel %vm92_vm2, %v798_v10, 0.0  ;;  %vm768_vm14 = vcmp.eq.s32.totalorder %v1434_v29, %v765_v14 }
 0x33d   :  { %716 = vadd.xlane.f32.xlu2 %v715_v50  ;;  %757 = vadd.xlane.f32.xlu1 %v756_v51  ;;  %vm769_vm15 = vcmp.eq.s32.totalorder %v1441_v20, %v765_v14  ;;  %vm767_vm3 = vcmp.eq.s32.totalorder %v1438_v45, %v765_v14  ;;  %vm766_vm4 = vcmp.eq.s32.totalorder %v1426_v43, %v765_v14 }
 0x33e   :  { %754 = vadd.xlane.f32.xlu0 %v753_v54  ;;  %v843_v27 = vmul.f32 %v1391_v26, %v839_v9  ;;  %vm813_vm6 = vcmp.eq.s32.totalorder %v1426_v43, %v812_v47  ;;  %vm814_vm8 = vcmp.eq.s32.totalorder %v1438_v45, %v812_v47  ;;  %vm816_vm9 = vcmp.eq.s32.totalorder %v1441_v20, %v812_v47 }
 0x33f   :  { %vm815_vm10 = vcmp.eq.s32.totalorder %v1434_v29, %v812_v47 }
 0x340   :  { %v847_v35 = vsel %vm92_vm2, %v843_v27, 0.0  ;;  %v859_v27 = vperm.slane %v1431_v44, 3 }
 0x341   :  { %v678_v55 = vpop.f32.mrf.mxu3 }
 0x342   :  { %v836_v6 = vadd.f32 %v834_v17, %v678_v55  ;;  %vm860_vm11 = vcmp.eq.s32.totalorder %v1426_v43, %v859_v27  ;;  %vm861_vm12 = vcmp.eq.s32.totalorder %v1438_v45, %v859_v27  ;;  %vm862_vm13 = vcmp.eq.s32.totalorder %v1434_v29, %v859_v27 }
 0x344   :  { %v840_v24 = vmax.f32 %v836_v6, 0.0 }
 0x345   :  { %760 = vadd.xlane.f32.xlu2 %v759_v1  ;;  %801 = vadd.xlane.f32.xlu1 %v800_v2 }
 0x346   :  { %763 = vadd.xlane.f32.xlu0 %v762_v4  ;;  %v844_v31 = vmul.f32 %v1391_v26, %v840_v24 }
 0x348   :  { %v850_v37 = vsel %vm92_vm2, %v844_v31, 0.0 }
 0x349   :  { %v681_v7 = vpop.f32.mrf.mxu3 }
 0x34a   :  { %v837_v8 = vadd.f32 %v834_v17, %v681_v7 }
 0x34c   :  { %v841_v12 = vmax.f32 %v837_v8, 0.0 }
 0x34d   :  { %804 = vadd.xlane.f32.xlu2 %v803_v13  ;;  %810 = vadd.xlane.f32.xlu1 %v809_v21 }
 0x34e   :  { %807 = vadd.xlane.f32.xlu0 %v806_v11  ;;  %v845_v28 = vmul.f32 %v1391_v26, %v841_v12 }
 0x350   :  { %v853_v36 = vsel %vm92_vm2, %v845_v28, 0.0 }
 0x351   :  { %v684_v30 = vpop.f32.mrf.mxu3 }
 0x352   :  { %v838_v32 = vadd.f32 %v834_v17, %v684_v30 }
 0x354   :  { %v842_v33 = vmax.f32 %v838_v32, 0.0 }
 0x355   :  { %848 = vadd.xlane.f32.xlu2 %v847_v35  ;;  %854 = vadd.xlane.f32.xlu1 %v853_v36 }
 0x356   :  { %851 = vadd.xlane.f32.xlu0 %v850_v37  ;;  %v846_v38 = vmul.f32 %v1391_v26, %v842_v33  ;;  %v718_v26 = vperm.slane %v1431_v44, 0 }
 0x358   :  { %v856_v34 = vsel %vm92_vm2, %v846_v38, 0.0  ;;  %vm721_vm0 = vcmp.eq.s32.totalorder %v1434_v29, %v718_v26  ;;  %vm720_vm1 = vcmp.eq.s32.totalorder %v1438_v45, %v718_v26  ;;  %vm722_vm2 = vcmp.eq.s32.totalorder %v1441_v20, %v718_v26 }
 0x359   :  { %vm719_vm5 = vcmp.eq.s32.totalorder %v1426_v43, %v718_v26 }
 0x35d   :  { %857 = vadd.xlane.f32.xlu2 %v856_v34 }
 0x3a8   :  { %v714_v40 = vpop.xlane.xlu2 %713  ;;  %v711_v39 = vpop.xlane.xlu1 %710 }
 0x3a9   :  { %v708_v41 = vpop.xlane.xlu0 %707  ;;  %v725_v51 = vsel %vm721_vm0, %v714_v40, -inf  ;;  %v724_v52 = vsel %vm720_vm1, %v711_v39, -inf  ;;  %vm885_vm0 = vcmask 1042432   ;;  %vm887_vm1 = vcmask 60416  }
 0x3aa   :  { %v723_v57 = vsel %vm719_vm5, %v708_v41, -inf  ;;  %v729_v60 = vsel %vm456_vm7, %v725_v51, -inf  ;;  %v728_v55 = vsel %vm456_vm7, %v724_v52, -inf }
 0x3ab   :  { %v727_v3 = vsel %vm456_vm7, %v723_v57, -inf }
 0x3ac   :  { %v731_v21 = vmax.f32 %v727_v3, %v728_v55 }
 0x3b0   :  { %v717_v25 = vpop.xlane.xlu2 %716  ;;  %v758_v42 = vpop.xlane.xlu1 %757 }
 0x3b1   :  { %v755_v19 = vpop.xlane.xlu0 %754  ;;  %v726_v53 = vsel %vm722_vm2, %v717_v25, -inf  ;;  %v771_v54 = vsel %vm767_vm3, %v758_v42, -inf }
 0x3b2   :  { %v770_v56 = vsel %vm766_vm4, %v755_v19, -inf  ;;  %v730_v62 = vsel %vm456_vm7, %v726_v53, -inf  ;;  %v775_v63 = vsel %vm456_vm7, %v771_v54, -inf }
 0x3b3   :  { %v774_v0 = vsel %vm456_vm7, %v770_v56, -inf  ;;  %v732_v10 = vmax.f32 %v729_v60, %v730_v62 }
 0x3b4   :  { %v778_v8 = vmax.f32 %v774_v0, %v775_v63 }
 0x3b5   :  { %v733_v28 = vmax.f32 %v731_v21, %v732_v10  ;;  %v1036_v10 = vld [vmem:[%s1494_s0 + $0x110] ss:$0 sm:$0xff] }
 0x3b7   :  { %v734_v35 = vrot.slane %v733_v28, 4 }
 0x3b8   :  { %v761_v46 = vpop.xlane.xlu2 %760  ;;  %v802_v23 = vpop.xlane.xlu1 %801 }
 0x3b9   :  { %v764_v48 = vpop.xlane.xlu0 %763  ;;  %v772_v49 = vsel %vm768_vm14, %v761_v46, -inf  ;;  %v817_v61 = vsel %vm813_vm6, %v802_v23, -inf  ;;  %vm863_vm14 = vcmp.eq.s32.totalorder %v1441_v20, %v859_v27  ;;  %v735_v39 = vmax.f32 %v733_v28, %v734_v35 }
 0x3ba   :  { %v773_v50 = vsel %vm769_vm15, %v764_v48, -inf  ;;  %v776_v58 = vsel %vm456_vm7, %v772_v49, -inf  ;;  %v821_v22 = vsel %vm456_vm7, %v817_v61, -inf  ;;  %vm881_vm15 = vcmask 1040384  }
 0x3bb   :  { %v777_v59 = vsel %vm456_vm7, %v773_v50, -inf  ;;  %v736_v46 = vrot.slane %v735_v39, 2  ;;  %vm929_vm6 = vcmp.eq.s32.totalorder %v1100_v16, 1 }
 0x3bc   :  { %v779_v4 = vmax.f32 %v776_v58, %v777_v59 }
 0x3bd   :  { %v737_v50 = vmax.f32 %v735_v39, %v736_v46 }
 0x3be   :  { %v780_v24 = vmax.f32 %v778_v8, %v779_v4 }
 0x3bf   :  { %v738_v56 = vrot.slane %v737_v50, 1 }
 0x3c0   :  { %v805_v1 = vpop.xlane.xlu2 %804  ;;  %v811_v2 = vpop.xlane.xlu1 %810  ;;  %v781_v31 = vrot.slane %v780_v24, 4 }
 0x3c1   :  { %v818_v15 = vsel %vm814_vm8, %v805_v1, -inf  ;;  %v820_v17 = vsel %vm816_vm9, %v811_v2, -inf  ;;  %v808_v18 = vpop.xlane.xlu0 %807  ;;  %v739_v61 = vmax.f32 %v737_v50, %v738_v56  ;;  %vm928_vm8 = vcmp.eq.s32.totalorder %v1100_v16, 0 }
 0x3c2   :  { %v822_v5 = vsel %vm456_vm7, %v818_v15, -inf  ;;  %v824_v6 = vsel %vm456_vm7, %v820_v17, -inf  ;;  %v819_v7 = vsel %vm815_vm10, %v808_v18, -inf  ;;  %v782_v37 = vmax.f32 %v780_v24, %v781_v31 }
 0x3c3   :  { %v825_v9 = vmax.f32 %v821_v22, %v822_v5  ;;  %v823_v12 = vsel %vm456_vm7, %v819_v7, -inf }
 0x3c4   :  { %v826_v13 = vmax.f32 %v823_v12, %v824_v6  ;;  %v783_v19 = vrot.slane %v782_v37, 2 }
 0x3c6   :  { %v827_v11 = vmax.f32 %v825_v9, %v826_v13  ;;  %v784_v48 = vmax.f32 %v782_v37, %v783_v19 }
 0x3c8   :  { %v849_v30 = vpop.xlane.xlu2 %848  ;;  %v828_v32 = vrot.slane %v827_v11, 4  ;;  %v855_v36 = vpop.xlane.xlu1 %854  ;;  %v785_v52 = vrot.slane %v784_v48, 1 }
 0x3c9   :  { %v852_v33 = vpop.xlane.xlu0 %851  ;;  %v864_v38 = vsel %vm860_vm11, %v849_v30, -inf  ;;  %v866_v41 = vsel %vm862_vm13, %v855_v36, -inf }
 0x3ca   :  { %v865_v34 = vsel %vm861_vm12, %v852_v33, -inf  ;;  %v829_v40 = vmax.f32 %v827_v11, %v828_v32  ;;  %v868_v25 = vsel %vm456_vm7, %v864_v38, -inf  ;;  %v870_v14 = vsel %vm456_vm7, %v866_v41, -inf }
 0x3cb   :  { %v869_v42 = vsel %vm456_vm7, %v865_v34, -inf  ;;  %v786_v58 = vmax.f32 %v784_v48, %v785_v52 }
 0x3cc   :  { %v830_v45 = vrot.slane %v829_v40, 2  ;;  %v872_v47 = vmax.f32 %v868_v25, %v869_v42 }
 0x3cd   :  { %v882_v63 = vsel %vm881_vm15, %v739_v61, %v786_v58 }
 0x3ce   :  { %v831_v20 = vmax.f32 %v829_v40, %v830_v45 }
 0x3d0   :  { %v858_v43 = vpop.xlane.xlu2 %857  ;;  %v832_v54 = vrot.slane %v831_v20, 1 }
 0x3d1   :  { %v867_v26 = vsel %vm863_vm14, %v858_v43, -inf }
 0x3d2   :  { %v871_v29 = vsel %vm456_vm7, %v867_v26, -inf  ;;  %v833_v60 = vmax.f32 %v831_v20, %v832_v54  ;;  %vm883_vm7 = vcmask 1041408  }
 0x3d3   :  { %v873_v23 = vmax.f32 %v870_v14, %v871_v29 }
 0x3d4   :  { %v884_v0 = vsel %vm883_vm7, %v882_v63, %v833_v60 }
 0x3d5   :  { %v874_v49 = vmax.f32 %v872_v47, %v873_v23 }
 0x3d7   :  { %v875_v51 = vrot.slane %v874_v49, 4 }
 0x3d9   :  { %v876_v53 = vmax.f32 %v874_v49, %v875_v51 }
 0x3db   :  { %v877_v57 = vrot.slane %v876_v53, 2 }
 0x3dd   :  { %v878_v59 = vmax.f32 %v876_v53, %v877_v57 }
 0x3df   :  { %v879_v55 = vrot.slane %v878_v59, 1 }
 0x3e1   :  { %v880_v62 = vmax.f32 %v878_v59, %v879_v55 }
 0x3e3   :  { %v886_v1 = vsel %vm885_vm0, %v884_v0, %v880_v62 }
 0x3e4   :  { %v888_v2 = vsel %vm887_vm1, %v886_v1, -inf }
 0x3e5   :  { %889 = vmax.xlane.f32.xlu0 %v888_v2 }
 0x458   :  { %v890_v3 = vpop.xlane.xlu0 %889 }
 0x459   :  { %vm891_vm2 = vcmp.eq.f32.partialorder %v886_v1, %v890_v3  ;;  %v927_v8 = vadd.f32 %v1036_v10, %v890_v3 }
 0x45a   :  { %v892_v4 = vsel %vm891_vm2, %v1100_v16, 8 }
 0x45b   :  { %v893_v15 = vsel %vm887_vm1, %v892_v4, 2147483647 }
 0x45c   :  { %v895_v17 = vshra.s32 %v893_v15, 16  ;;  %v894_v22 = vand.u32 65535, %v893_v15 }
 0x45e   :  { %v897_v18 = vcvt.s32.f32 %v895_v17  ;;  %v896_v6 = vcvt.s32.f32 %v894_v22 }
 0x460   :  { %898 = vmin.xlane.f32.xlu1 %v897_v18 }
 0x4d3   :  { %v899_v5 = vpop.xlane.xlu1 %898 }
 0x4d4   :  { %vm900_vm3 = vcmp.eq.f32.partialorder %v897_v18, %v899_v5  ;;  %v905_v9 = vcvt.f32.s32 %v899_v5 }
 0x4d5   :  { %v901_v7 = vsel %vm900_vm3, %v896_v6, inf }
 0x4d6   :  { %902 = vmin.xlane.f32.xlu2 %v901_v7  ;;  %v906_v13 = vshll.u32 %v905_v9, 16 }
 0x4ee   :  { %934 = vperm.xlu2 %1028, %v927_v8  }
 0x549   :  { %v903_v12 = vpop.xlane.xlu2 %902 }
 0x54a   :  { %v904_v21 = vcvt.f32.s32 %v903_v12 }
 0x54c   :  { %v907_v24 = vadd.s32 %v906_v13, %v904_v21 }
 0x54e   :  { %vm908_vm4 = vcmp.lt.s32.totalorder %v907_v24, 7 }
 0x54f   :  { %v909_v11 = vsel %vm908_vm4, %v907_v24, 7 }
 0x550   :  { %vm910_vm5 = vcmp.eq.s32.totalorder %v1100_v16, %v909_v11 }
 0x551   :  { %v911_v27 = vsel %vm910_vm5, %v1431_v44, 0  ;;  %v935_v44 = vpop.permute.xlu2 %934 }
 0x552   :  { %v912_v28 = vsel %vm887_vm1, %v911_v27, 0 }
 0x553   :  { %v914_v30 = vshrl.u32 %v912_v28, 16  ;;  %v913_v31 = vand.u32 65535, %v912_v28 }
 0x555   :  { %v916_v32 = vcvt.s32.f32 %v914_v30  ;;  %v915_v33 = vcvt.s32.f32 %v913_v31 }
 0x557   :  { %919 = vadd.xlane.f32.xlu0 %v916_v32  ;;  %917 = vadd.xlane.f32.xlu1 %v915_v33 }
 0x5ca   :  { %v920_v35 = vpop.xlane.xlu0 %919  ;;  %v918_v36 = vpop.xlane.xlu1 %917 }
 0x5cb   :  { %v922_v37 = vcvt.f32.s32 %v920_v35  ;;  %v921_v34 = vcvt.f32.s32 %v918_v36 }
 0x5cd   :  { %v923_v38 = vshll.u32 %v922_v37, 16 }
 0x5cf   :  { %v924_v40 = vadd.s32 %v923_v38, %v921_v34 }
 0x5d1   :  { %v930_v39 = vcvt.s32.f32 %v924_v40 }
 0x5d3   :  { %v931_v41 = vsel %vm929_vm6, %v930_v39, 0.0 }
 0x5d4   :  { %v937_v25 = vsel %vm928_vm8, %v935_v44, %v931_v41 }
 0x5d5   :  { %938 = vst [vmem:[%s1498_s4] sm:$0xf] %v937_v25 }

</bundles_post_ra>
